<compile_context>
chip_gen: v7x
topology: tpu7x:2x2x1
jax: 0.10.0
libtpu: 0.0.40
codegen_flags: <defaults>
</compile_context>

<pallas_src>
import jax
import jax.numpy as jnp
import numpy as np
from jax.experimental import pallas as pl
from jax.experimental.pallas import tpu as pltpu

_LANE = 128


def _round_up(n, m):
    return (n + m - 1) // m * m


def _vmem_capacity_bytes():
    try:
        return int(pltpu.get_tpu_info().vmem_capacity_bytes)
    except Exception:
        return 64 * 1024 * 1024  # conservative fallback (v7x per-TensorCore)


def fair_linear_kernel(x_ref, w_ref, b_ref, o_ref, acc_ref):
    # x_ref: (TB, TP) VMEM tile (stream dtype), w_ref: (1, TP) VMEM (resident
    # per k-step), b_ref: (1,) SMEM scalar, o_ref: (TB, 1) f32 output block,
    # acc_ref: (TB, 1) f32 VMEM scratch accumulator.
    k = pl.program_id(1)

    @pl.when(k == 0)
    def _():
        acc_ref[...] = jnp.zeros_like(acc_ref)

    # Upcast in-vreg (no-op for f32 streaming; required on v5e for bf16 inputs).
    prod = x_ref[...].astype(jnp.float32) * w_ref[...].astype(jnp.float32)
    acc_ref[...] += jnp.sum(prod, axis=-1, keepdims=True)   # XLU lane reduce

    @pl.when(k == pl.num_programs(1) - 1)
    def _():
        o_ref[...] = acc_ref[...] + b_ref[0]                 # scalar bias (SMEM)


def fair_linear_forward(x, x_mean, x_std, weight, bias, *,
                        stream_dtype=jnp.float32, max_block_p=None):
    """y = ((x - x_mean) / x_std) @ weight.T + bias   -> (B, 1) float32."""
    B, P = x.shape

    # --- fold standardization into the linear layer (tiny (1,P) work, plain JAX) ---
    inv_std = 1.0 / x_std.astype(jnp.float32)                              # (1, P)
    w_folded = weight.astype(jnp.float32) * inv_std                        # (1, P)
    b_folded = (bias.astype(jnp.float32)
                - jnp.sum(x_mean.astype(jnp.float32) * inv_std
                          * weight.astype(jnp.float32), axis=-1))          # (1,)

    elem = np.dtype(stream_dtype).itemsize
    x_s = x.astype(stream_dtype)
    w_s = w_folded.astype(stream_dtype)

    # --- generation-aware VMEM budgets ---
    vmem_cap = _vmem_capacity_bytes()
    small_vmem = vmem_cap < 100 * 1024 * 1024          # v7x: 64 MiB per TC
    if small_vmem:
        work_budget = 24 * 1024 * 1024                 # total in-flight VMEM target
        vmem_limit = 40 * 1024 * 1024
        min_grid_steps = 8                             # keep both v7x TCs fed
    else:                                              # v5e / v6e: 128 MiB VMEM
        work_budget = 48 * 1024 * 1024
        vmem_limit = 80 * 1024 * 1024
        min_grid_steps = 1

    def _xrow(tp):                                     # real VMEM bytes per x row
        return _round_up(tp, _LANE) * elem

    # --- feature (reduction) tile: guard very large P so even a minimal 8-row
    #     x tile (+ resident w', double buffered) fits the budget ---
    if max_block_p is None:
        TP = P
    else:
        TP = max(_LANE, (min(max_block_p, P) // _LANE) * _LANE)
    if 32 * _xrow(TP) > work_budget:                   # 2 bufs * 8 rows * (x + w')
        TP = max(_LANE, (work_budget // (32 * elem)) // _LANE * _LANE)
    if TP >= P:
        TP, Pp = P, P
    else:
        Pp = _round_up(P, TP)

    # --- batch tile from the true footprint: x (dbl-buffered), lane-padded
    #     (TB,1) output (dbl-buffered), f32 accumulator, resident w' ---
    x_row = _xrow(TP)
    out_row = _LANE * 4                                # (TB,1) f32, lane padded
    w_bytes = 2 * 8 * x_row                            # (1,TP) pads to 8 sublanes
    per_row = 2 * x_row + 2 * out_row + out_row        # x dbl + out dbl + acc
    tb_cap = max(8, ((work_budget - w_bytes) // per_row) // 8 * 8)
    TB = min(tb_cap, _round_up(B, 8))
    if min_grid_steps > 1:                             # v7x: >= ~8 grid steps
        TB = min(TB, max(8, _round_up(-(-B // min_grid_steps), 8)))
    TB = max(8, (TB // 8) * 8)

    Bp = _round_up(B, TB)
    if (Bp, Pp) != (B, P):
        # Zero padding: extra rows just produce b' (sliced off below); extra
        # feature columns contribute 0 to the reduction.
        x_s = jnp.pad(x_s, ((0, Bp - B), (0, Pp - P)))
        w_s = jnp.pad(w_s, ((0, 0), (0, Pp - P)))

    nb, nk = Bp // TB, Pp // TP

    out = pl.pallas_call(
        fair_linear_kernel,
        out_shape=jax.ShapeDtypeStruct((Bp, 1), jnp.float32),
        grid=(nb, nk),
        in_specs=[
            pl.BlockSpec((TB, TP), lambda i, k: (i, k)),           # x: streamed tiles
            pl.BlockSpec((1, TP), lambda i, k: (0, k)),            # w' tile
            pl.BlockSpec(memory_space=pltpu.MemorySpace.SMEM),     # b': SMEM scalar
        ],
        out_specs=pl.BlockSpec((TB, 1), lambda i, k: (i, 0)),
        scratch_shapes=[pltpu.VMEM((TB, 1), jnp.float32)],
        compiler_params=pltpu.CompilerParams(
            dimension_semantics=("parallel", "arbitrary"),
            vmem_limit_bytes=vmem_limit,
        ),
        cost_estimate=pl.CostEstimate(
            flops=2 * B * P,
            transcendentals=0,
            bytes_accessed=elem * (B * P + P) + 4 * B,
        ),
    )(x_s, w_s, b_folded)
    return out[:B]


if __name__ == "__main__":
    key = jax.random.PRNGKey(0)
    k_train, k_x, k_w, k_b = jax.random.split(key, 4)

    batch, p = 8, 32  # small demo shapes: (batch_size, input_dim)

    # "Training" data defining the standardization stats (module.standardize()).
    train_x = jax.random.normal(k_train, (64, p), dtype=jnp.float32) * 2.0 + 0.5
    x_mean = jnp.mean(train_x, axis=0, keepdims=True)                  # (1, p)
    x_std = jnp.std(train_x, axis=0, keepdims=True)                    # (1, p)

    # Deterministic parameters (torch.nn.Linear(p, 1): weight (1,p), bias (1,)).
    weight = jax.random.uniform(k_w, (1, p), jnp.float32, -0.1, 0.1)
    bias = jax.random.uniform(k_b, (1,), jnp.float32, -0.1, 0.1)

    # Example input batch.
    x = jax.random.normal(k_x, (batch, p), dtype=jnp.float32)

    # Pure-JAX reference (unfused form, matches the PyTorch module exactly).
    y_ref = ((x - x_mean) / x_std) @ weight.T + bias[None, :]

    # 1) Default path: f32 streaming.
    y = jax.block_until_ready(fair_linear_forward(x, x_mean, x_std, weight, bias))
    np.testing.assert_allclose(np.asarray(y), np.asarray(y_ref),
                               rtol=1e-4, atol=1e-5)
    assert y.shape == (batch, 1)

    # 2) Exercise the feature-tiled (reduction grid axis) accumulator path.
    p2 = 256
    x2 = jax.random.normal(k_x, (batch, p2), dtype=jnp.float32)
    m2 = jnp.zeros((1, p2), jnp.float32)
    s2 = jnp.ones((1, p2), jnp.float32)
    w2 = jax.random.uniform(k_w, (1, p2), jnp.float32, -0.1, 0.1)
    y2 = jax.block_until_ready(
        fair_linear_forward(x2, m2, s2, w2, bias, max_block_p=128))
    y2_ref = ((x2 - m2) / s2) @ w2.T + bias[None, :]
    np.testing.assert_allclose(np.asarray(y2), np.asarray(y2_ref),
                               rtol=1e-4, atol=1e-5)

    # 3) Optional bf16 streaming (halves HBM bytes on a read-bound kernel).
    y_bf16 = jax.block_until_ready(
        fair_linear_forward(x, x_mean, x_std, weight, bias,
                            stream_dtype=jnp.bfloat16))
    np.testing.assert_allclose(np.asarray(y_bf16), np.asarray(y_ref),
                               rtol=5e-2, atol=5e-2)

    print("KERNEL_OK")
</pallas_src>

<mosaic_0001>
module attributes {stable_mosaic.version = 11 : i64} {
  func.func @fair_linear_kernel(%arg0: i32, %arg1: i32, %arg2: memref<8x32xf32, #tpu.memory_space<vmem>>, %arg3: memref<1x32xf32, #tpu.memory_space<vmem>>, %arg4: memref<1xf32, #tpu.memory_space<smem>>, %arg5: memref<8x1xf32, #tpu.memory_space<vmem>>, %arg6: memref<8x1xf32, #tpu.memory_space<vmem>>) attributes {dimension_semantics = [#tpu.dimension_semantics<parallel>, #tpu.dimension_semantics<arbitrary>], iteration_bounds = array<i64: 1, 1>, scalar_prefetch = 0 : i64, scratch_operands = 1 : i64, tpu.core_type = #tpu.core_type<tc>, window_params = [{transform_indices = @transform_0, window_bounds = array<i64: 8, 32>}, {transform_indices = @transform_1, window_bounds = array<i64: 1, 32>}, {transform_indices = @transform_2, window_bounds = array<i64: 1>}, {transform_indices = @transform_3, window_bounds = array<i64: 8, 1>}]} {
    %c0_i32 = arith.constant 0 : i32
    %0 = arith.cmpi eq, %arg1, %c0_i32 : i32
    %1 = arith.extui %0 : i1 to i32
    %c0_i32_0 = arith.constant 0 : i32
    %2 = arith.cmpi ne, %1, %c0_i32_0 : i32
    scf.if %2 {
      %cst_10 = arith.constant 0.000000e+00 : f32
      %15 = vector.broadcast %cst_10 : f32 to vector<8x1xf32>
      %c0_11 = arith.constant 0 : index
      %c0_12 = arith.constant 0 : index
      %16 = vector.load %arg6[%c0_11, %c0_12] : memref<8x1xf32, #tpu.memory_space<vmem>>, vector<8x1xf32>
      tpu.vector_store %arg6[%c0_11, %c0_12], %15 {strides = array<i32>} : memref<8x1xf32, #tpu.memory_space<vmem>>, vector<8x1xf32>,
    } else {
    }
    %c0 = arith.constant 0 : index
    %c0_1 = arith.constant 0 : index
    %3 = vector.load %arg2[%c0, %c0_1] : memref<8x32xf32, #tpu.memory_space<vmem>>, vector<8x32xf32>
    %c0_2 = arith.constant 0 : index
    %c0_3 = arith.constant 0 : index
    %4 = vector.load %arg3[%c0_2, %c0_3] : memref<1x32xf32, #tpu.memory_space<vmem>>, vector<1x32xf32>
    %5 = vector.broadcast %4 : vector<1x32xf32> to vector<8x32xf32>
    %6 = arith.mulf %3, %5 : vector<8x32xf32>
    %c0_4 = arith.constant 0 : index
    %c0_5 = arith.constant 0 : index
    %7 = vector.load %arg6[%c0_4, %c0_5] : memref<8x1xf32, #tpu.memory_space<vmem>>, vector<8x1xf32>
    %cst = arith.constant dense<0.000000e+00> : vector<8xf32>
    %8 = vector.multi_reduction <add>, %6, %cst [1] : vector<8x32xf32> to vector<8xf32>
    %9 = vector.shape_cast %8 : vector<8xf32> to vector<8x1xf32>
    %10 = arith.addf %7, %9 : vector<8x1xf32>
    %c0_6 = arith.constant 0 : index
    %c0_7 = arith.constant 0 : index
    %11 = vector.load %arg6[%c0_6, %c0_7] : memref<8x1xf32, #tpu.memory_space<vmem>>, vector<8x1xf32>
    tpu.vector_store %arg6[%c0_6, %c0_7], %10 {strides = array<i32>} : memref<8x1xf32, #tpu.memory_space<vmem>>, vector<8x1xf32>,
    %c0_i32_8 = arith.constant 0 : i32
    %12 = arith.cmpi eq, %arg1, %c0_i32_8 : i32
    %13 = arith.extui %12 : i1 to i32
    %c0_i32_9 = arith.constant 0 : i32
    %14 = arith.cmpi ne, %13, %c0_i32_9 : i32
    scf.if %14 {
      %c0_10 = arith.constant 0 : index
      %c0_11 = arith.constant 0 : index
      %15 = vector.load %arg6[%c0_10, %c0_11] : memref<8x1xf32, #tpu.memory_space<vmem>>, vector<8x1xf32>
      %c0_12 = arith.constant 0 : index
      %16 = memref.load %arg4[%c0_12] : memref<1xf32, #tpu.memory_space<smem>>
      %17 = vector.broadcast %16 : f32 to vector<8x1xf32>
      %18 = arith.addf %15, %17 : vector<8x1xf32>
      %c0_13 = arith.constant 0 : index
      %c0_14 = arith.constant 0 : index
      %19 = vector.load %arg5[%c0_13, %c0_14] : memref<8x1xf32, #tpu.memory_space<vmem>>, vector<8x1xf32>
      tpu.vector_store %arg5[%c0_13, %c0_14], %18 {strides = array<i32>} : memref<8x1xf32, #tpu.memory_space<vmem>>, vector<8x1xf32>,
    } else {
    }
    return
  }
  func.func @transform_0(%arg0: i32, %arg1: i32) -> (i32, i32) {
    %c0_i32 = arith.constant 0 : i32
    return %arg0, %arg1 : i32, i32
  }
  func.func @transform_1(%arg0: i32, %arg1: i32) -> (i32, i32) {
    %c0_i32 = arith.constant 0 : i32
    %c0_i32_0 = arith.constant 0 : i32
    return %c0_i32, %arg1 : i32, i32
  }
  func.func @transform_2(%arg0: i32, %arg1: i32) -> i32 {
    %c0_i32 = arith.constant 0 : i32
    %c0_i32_0 = arith.constant 0 : i32
    return %c0_i32 : i32
  }
  func.func @transform_3(%arg0: i32, %arg1: i32) -> (i32, i32) {
    %c0_i32 = arith.constant 0 : i32
    %c0_i32_0 = arith.constant 0 : i32
    return %arg0, %c0_i32 : i32, i32
  }
}

</mosaic_0001>

<bundles_post_ra>
// kernel: tpu_custom_call.1
= control target key start
LH: loop header
LB: loop body
LE: loop exit
PB: predicated region body
PF: predicated region fallthrough
CT: control target
= control target key end

     0   :  { %9 = vsyncpa [#allocation5], 0  ;;  %s90_s12 = smov [#allocation4]   ;;  %s136_s0 = inlined_call_operand.hbm [shape: f32[8,32], index: 0, kind: input, shape index: {}]   ;;  %s137_s1 = inlined_call_operand.vmem [shape: f32[1,32], index: 1, kind: input, shape index: {}]   ;;  %s138_s2 = inlined_call_operand.<no memory space> [shape: f32[1], index: 2, kind: input, shape index: {}]   ;;  %s139_s3 = inlined_call_operand.vmem [shape: f32[8,1], index: 3, kind: output, shape index: {}]  }
   0x1   :  { %s16_s13 = sshll.u32 %s90_s12, 4  ;;  %s66_s16 = scalar_lea.hbm %s136_s0, 128  ;;  %s17_s13 = int_to_ptr.vmem [resolvable:$true] %s16_s13 }
   0x2   :  { %p67_p0 = scmp.ne.s32.totalorder %s136_s0, %s66_s16  ;;  %p70_p1 = scmp.lt.u32.totalorder %s66_s16, %s136_s0 }
   0x4   :  { %p72_p2 = pnand %p70_p1, %p67_p0 }
   0x6   :  { %75 = shalt.err (!%p72_p2)
}
   0x7   :  { %s76_s21 = scalar_lea.vmem %s17_s13, 128  ;;  %p81_p4 = scmp.lt.s32.totalorder %s17_s13, %s17_s13 }
   0x8   :  { %p77_p3 = scmp.ne.s32.totalorder %s17_s13, %s76_s21  ;;  %p82_p5 = scmp.lt.s32.totalorder %s76_s21, %s76_s21 }
   0xa   :  { %p83_p6 = por %p82_p5, %p81_p4 }
   0xc   :  { %p84_p7 = pnand %p83_p6, %p77_p3 }
   0xe   :  { %87 = shalt.err (!%p84_p7)
}
   0xf   :  { %19 = dma.hbm_to_vmem [thread:$0]  %s136_s0, 128, %s17_s13, [#allocation5]  }
  0x10   :  { %88 = dma.done.wait [#allocation5], 128  }
  0x11   :  { %89 = vsyncadd [#allocation5], 4294967168  ;;  %vm31_vm0 = vcmask 7168   ;;  %v91_v0 = vmov 0.0   ;;  %v33_v1 = vld [vmem:[#allocation4] sm:$0xff]  ;;  %vm43_vm1 = vcmask 261120   ;;  %v55_v8 = vstv %s138_s2 }
  0x12   :  { %32 = vst.msk [vmem:[#allocation2] sm:$0xff] %vm31_vm0, %v91_v0  ;;  %v63_v2 = vld [vmem:[%s137_s1] ss:$0 sm:$0xff] }
  0x13   :  { %v41_v3 = vmul.f32 %v63_v2, %v33_v1 }
  0x15   :  { %v44_v4 = vsel %vm43_vm1, %v41_v3, 0.0 }
  0x16   :  { %45 = vadd.xlane.f32.xlu0 %v44_v4 }
  0x19   :  { %v42_v5 = vld [vmem:[#allocation2] sm:$0xff] }
  0xa3   :  { %v46_v6 = vpop.xlane.xlu0 %45 }
  0xa4   :  { %v47_v7 = vadd.f32 %v46_v6, %v42_v5 }
  0xa6   :  { %49 = vst.msk [vmem:[#allocation2] sm:$0xff] %vm31_vm0, %v47_v7 }
  0xad   :  { %v53_v9 = vld [vmem:[#allocation2] sm:$0xff] }
  0xae   :  { %v56_v10 = vadd.f32 %v55_v8, %v53_v9 }
  0xb0   :  { %57 = vst.msk [vmem:[%s139_s3] sm:$0xff] %vm31_vm0, %v56_v10 }
  0xb1   :  { %62 = vsyncpa [#allocation5], 1 }

</bundles_post_ra>
